<compile_context>
chip_gen: v5e
topology: v5e:2x2
jax: 0.10.0
libtpu: 0.0.40
codegen_flags: <defaults>
</compile_context>

<pallas_src>
import jax
import jax.numpy as jnp
from jax.experimental import pallas as pl
from jax.experimental.pallas import tpu as pltpu

_LANE = 128
_MAX_BLOCK_BYTES = 2 * 1024 * 1024  # ~2 MiB/block: 4 live buffers = 8 MiB VMEM


def _identity_kernel(x_ref, o_ref):
    # The entire "compute" of StraightThrough: pass the tile through unchanged.
    o_ref[...] = x_ref[...]


def _copy_2d(x2d: jax.Array) -> jax.Array:
    rows, cols = x2d.shape
    itemsize = jnp.dtype(x2d.dtype).itemsize

    # Largest row-tile that keeps the block around _MAX_BLOCK_BYTES.
    block_rows = min(rows, max(1, _MAX_BLOCK_BYTES // (cols * itemsize)))
    if block_rows < rows:
        # Partial tiles must satisfy the (8, 128) sublane constraint.
        block_rows = max(8, (block_rows // 8) * 8)

    grid = (pl.cdiv(rows, block_rows),)
    return pl.pallas_call(
        _identity_kernel,
        out_shape=jax.ShapeDtypeStruct((rows, cols), x2d.dtype),
        grid_spec=pl.GridSpec(
            grid=grid,
            in_specs=[pl.BlockSpec((block_rows, cols), lambda i: (i, 0))],
            out_specs=pl.BlockSpec((block_rows, cols), lambda i: (i, 0)),
        ),
        compiler_params=pltpu.CompilerParams(
            dimension_semantics=("parallel",),
            vmem_limit_bytes=32 * 1024 * 1024,
        ),
        cost_estimate=pl.CostEstimate(
            flops=0,
            transcendentals=0,
            bytes_accessed=2 * rows * cols * itemsize,
        ),
    )(x2d)


def straight_through(x: jax.Array) -> jax.Array:
    """Identity forward, matching StraightThrough.forward(input) -> input."""
    orig_shape = x.shape
    n = x.size
    if n == 0:
        return x

    flat = x.reshape(-1)

    # Only the ragged tail (if any) gets padded; aligned inputs go straight in.
    pad = (-n) % _LANE
    if pad:
        # TODO(synk): ragged tail handled with a minimal pad (one extra HBM pass).
        flat = jnp.pad(flat, (0, pad))
    m = flat.shape[0]

    # Pick a wide lane-dense column width (multiple of 128, up to 4096).
    cols = _LANE
    for c in (4096, 2048, 1024, 512, 256):
        if m % c == 0:
            cols = c
            break
    rows = m // cols

    out2d = _copy_2d(flat.reshape(rows, cols))

    out = out2d.reshape(-1)
    if pad:
        out = out[:n]
    return out.reshape(orig_shape)


if __name__ == "__main__":
    key = jax.random.PRNGKey(0)
    # Small NCHW input consistent with a typical conv activation.
    x = jax.random.normal(key, (2, 4, 16, 16), dtype=jnp.float32)

    y = straight_through(x)
    jax.block_until_ready(y)

    assert y.shape == x.shape, f"shape mismatch: {y.shape} vs {x.shape}"
    assert y.dtype == x.dtype, f"dtype mismatch: {y.dtype} vs {x.dtype}"
    assert bool(jnp.all(y == x)), "identity output mismatch"

    print("KERNEL_OK")
</pallas_src>

<mosaic_0001>
module attributes {stable_mosaic.version = 11 : i64} {
  func.func @_identity_kernel(%arg0: i32, %arg1: memref<1x2048xf32, #tpu.memory_space<vmem>>, %arg2: memref<1x2048xf32, #tpu.memory_space<vmem>>) attributes {dimension_semantics = [#tpu.dimension_semantics<parallel>], iteration_bounds = array<i64: 1>, scalar_prefetch = 0 : i64, scratch_operands = 0 : i64, tpu.core_type = #tpu.core_type<tc>, window_params = [{transform_indices = @transform_0, window_bounds = array<i64: 1, 2048>}, {transform_indices = @transform_1, window_bounds = array<i64: 1, 2048>}]} {
    %c0 = arith.constant 0 : index
    %c0_0 = arith.constant 0 : index
    %0 = vector.load %arg1[%c0, %c0_0] : memref<1x2048xf32, #tpu.memory_space<vmem>>, vector<1x2048xf32>
    %c0_1 = arith.constant 0 : index
    %c0_2 = arith.constant 0 : index
    %1 = vector.load %arg2[%c0_1, %c0_2] : memref<1x2048xf32, #tpu.memory_space<vmem>>, vector<1x2048xf32>
    tpu.vector_store %arg2[%c0_1, %c0_2], %0 {strides = array<i32>} : memref<1x2048xf32, #tpu.memory_space<vmem>>, vector<1x2048xf32>,
    return
  }
  func.func @transform_0(%arg0: i32) -> (i32, i32) {
    %c0_i32 = arith.constant 0 : i32
    %c0_i32_0 = arith.constant 0 : i32
    return %arg0, %c0_i32 : i32, i32
  }
  func.func @transform_1(%arg0: i32) -> (i32, i32) {
    %c0_i32 = arith.constant 0 : i32
    %c0_i32_0 = arith.constant 0 : i32
    return %arg0, %c0_i32 : i32, i32
  }
}

</mosaic_0001>

<bundles_post_ra>
// kernel: tpu_custom_call.1
= control target key start
LH: loop header
LB: loop body
LE: loop exit
PB: predicated region body
PF: predicated region fallthrough
CT: control target
= control target key end

     0   :  { %6 = vsyncpa [#allocation3], 0  ;;  %s116_s0 = inlined_call_operand.hbm [shape: f32[1,2048], index: 0, kind: input, shape index: {}]   ;;  %s117_s1 = inlined_call_operand.hbm [shape: f32[1,2048], index: 1, kind: output, shape index: {}]  }
   0x1   :  { %7 = vsyncpa [#allocation4], 0  ;;  %s13_s8 = sshll.u32 %s116_s0, 4  ;;  %s98_s9 = smov [#allocation2]   ;;  %s14_s8 = int_to_ptr.hbm [resolvable:$true] %s13_s8 }
   0x2   :  { %s15_s10 = sshll.u32 %s98_s9, 4  ;;  %s16_s10 = int_to_ptr.vmem [resolvable:$true] %s15_s10 }
   0x3   :  { %18 = dma.hbm_to_vmem [thread:$0]  %s14_s8, 256, %s16_s10, [#allocation3]  }
   0x4   :  { %94 = dma.done.wait [#allocation3], 256  }
   0x5   :  { %95 = vsyncadd [#allocation3], 4294967040  ;;  %s99_s11 = smov [#allocation5]   ;;  %s34_s15 = sshll.u32 %s117_s1, 4  ;;  %v23_v0 = vld [vmem:[#allocation2] sm:$0xff]  ;;  %v24_v1 = vld [vmem:[#allocation2 + $0x8] sm:$0xff]  ;;  %s35_s15 = int_to_ptr.hbm [resolvable:$true] %s34_s15 }
   0x6   :  { %s32_s12 = sshll.u32 %s99_s11, 4  ;;  %25 = vst [vmem:[#allocation5] sm:$0xff] %v23_v0  ;;  %s33_s12 = int_to_ptr.vmem [resolvable:$true] %s32_s12 }
   0x7   :  { %26 = vst [vmem:[#allocation5 + $0x8] sm:$0xff] %v24_v1 }
   0x8   :  { %37 = dma.vmem_to_hbm [thread:$0]  %s33_s12, 256, %s35_s15, [#allocation4]  }
   0x9   :  { %96 = dma.done.wait [#allocation4], 256  }
   0xa   :  { %97 = vsyncadd [#allocation4], 4294967040 }
   0xb   :  { %42 = vsyncpa [#allocation3], 1 }
   0xc   :  { %43 = vsyncpa [#allocation4], 1 }

</bundles_post_ra>
